<compile_context>
chip_gen: v5e
topology: v5e:2x2
jax: 0.10.0
libtpu: 0.0.40
codegen_flags: <defaults>
</compile_context>

<pallas_src>
import functools

import jax
import jax.numpy as jnp
from jax import lax
from jax.experimental import pallas as pl
from jax.experimental.pallas import tpu as pltpu


def _conv_bn_tanh_kernel(x_ref, b_ref, shift_ref, o_ref, *, kh, ho):
    """Fused conv + BN + tanh for one batch image.

    x_ref     : (1, Hp, Wp*Cin)        lane-dense padded input rows
    b_ref     : (KH*Wp*Cin, Wo*Cout)   banded weight matrix (BN scale folded in)
    shift_ref : (1, Wo*Cout)           folded BN/bias shift, tiled over Wo
    o_ref     : (1, Ho, Wo*Cout)       lane-dense output rows
    """
    # Row-wise im2col: output row y needs input rows y .. y+kh-1.  Concatenating
    # the kh row-shifted views along lanes gives a (Ho, kh*Wp*Cin) patch; a single
    # MXU matmul against the banded weight matrix then performs the full KhxKw
    # convolution (the dx taps and Cin are already folded into B).
    patch = jnp.concatenate(
        [x_ref[0, dy:dy + ho, :] for dy in range(kh)], axis=1)
    acc = jnp.dot(patch.astype(jnp.float32), b_ref[...],
                  preferred_element_type=jnp.float32)          # (Ho, Wo*Cout) f32
    y = jnp.tanh(acc + shift_ref[...])                          # BN shift + tanh
    o_ref[0] = y.astype(o_ref.dtype)


def convolution_block(x_nchw, w_oihw, bias, gamma, beta, run_mean, run_var,
                      *, stride=1, groups=1, padding=None, eps=1e-5):
    """Pallas implementation of ConvolutionBlock.forward (BN in inference mode)."""
    assert stride == 1 and groups == 1, "only the module defaults are supported"

    N, Cin, H, W = x_nchw.shape
    Cout, _, KH, KW = w_oihw.shape
    pad = (KH // 2) if padding is None else padding
    Hp, Wp = H + 2 * pad, W + 2 * pad
    Ho, Wo = Hp - KH + 1, Wp - KW + 1          # stride 1 (== H, W for pad=k//2)

    # ---- BN folding: scale into weights, shift as per-channel add ----
    scale = gamma / jnp.sqrt(run_var + eps)                       # (Cout,)
    shift = beta + (bias - run_mean) * scale                      # (Cout,)
    w_hwio = jnp.transpose(w_oihw, (2, 3, 1, 0)).astype(jnp.float32)  # (KH,KW,Cin,Cout)
    w_scaled = w_hwio * scale[None, None, None, :]

    # ---- banded ("lowered") weight matrix B ----
    #   B[dy, (x+dx)*Cin + ci, x*Cout + co] = w_scaled[dy, dx, ci, co]
    # so that  (row-im2col patch) @ B  == conv output, one matmul per image.
    eyes = [jnp.eye(Wp, Wo, k=-dx, dtype=jnp.float32) for dx in range(KW)]
    B = jnp.stack([
        sum(jnp.kron(eyes[dx], w_scaled[dy, dx]) for dx in range(KW))
        for dy in range(KH)
    ])                                                            # (KH, Wp*Cin, Wo*Cout)
    B = B.reshape(KH * Wp * Cin, Wo * Cout)

    # shift broadcast over the flattened (Wo*Cout) lane dimension
    shift_row = jnp.tile(shift.astype(jnp.float32), (Wo,)).reshape(1, Wo * Cout)

    # ---- lane-dense activations: NCHW -> NHWC -> pad -> (N, Hp, Wp*Cin) ----
    x_nhwc = jnp.transpose(x_nchw, (0, 2, 3, 1))
    x_pad = jnp.pad(x_nhwc, ((0, 0), (pad, pad), (pad, pad), (0, 0)))
    x_flat = x_pad.reshape(N, Hp, Wp * Cin)

    kernel = functools.partial(_conv_bn_tanh_kernel, kh=KH, ho=Ho)

    out_dtype = x_nchw.dtype
    flops = 2 * N * Ho * Wo * KH * KW * Cin * Cout
    bytes_accessed = int(x_flat.size * 4 + B.size * 4 + shift_row.size * 4
                         + N * Ho * Wo * Cout * jnp.dtype(out_dtype).itemsize)
    cost = pl.CostEstimate(flops=int(flops),
                           transcendentals=int(N * Ho * Wo * Cout),
                           bytes_accessed=bytes_accessed)

    out_flat = pl.pallas_call(
        kernel,
        out_shape=jax.ShapeDtypeStruct((N, Ho, Wo * Cout), out_dtype),
        grid_spec=pltpu.PrefetchScalarGridSpec(
            num_scalar_prefetch=0,
            grid=(N,),
            in_specs=[
                pl.BlockSpec((1, Hp, Wp * Cin), lambda n: (n, 0, 0)),
                pl.BlockSpec((KH * Wp * Cin, Wo * Cout), lambda n: (0, 0)),
                pl.BlockSpec((1, Wo * Cout), lambda n: (0, 0)),
            ],
            out_specs=pl.BlockSpec((1, Ho, Wo * Cout), lambda n: (n, 0, 0)),
        ),
        compiler_params=pltpu.CompilerParams(
            dimension_semantics=("parallel",),            # batch -> both TCs on v7x
            vmem_limit_bytes=48 * 1024 * 1024,            # headroom under v7x's 64 MiB
        ),
        cost_estimate=cost,
    )(x_flat, B, shift_row)

    # (N, Ho, Wo*Cout) -> NCHW
    out_nhwc = out_flat.reshape(N, Ho, Wo, Cout)
    return jnp.transpose(out_nhwc, (0, 3, 1, 2))


def _reference(x_nchw, w_oihw, bias, gamma, beta, run_mean, run_var,
               *, padding, eps=1e-5):
    """Pure-JAX reference (eval-mode BN), NCHW in/out."""
    x_nhwc = jnp.transpose(x_nchw, (0, 2, 3, 1))
    w_hwio = jnp.transpose(w_oihw, (2, 3, 1, 0))
    conv = lax.conv_general_dilated(
        x_nhwc, w_hwio, window_strides=(1, 1),
        padding=[(padding, padding), (padding, padding)],
        dimension_numbers=("NHWC", "HWIO", "NHWC"),
    ) + bias
    y = (conv - run_mean) / jnp.sqrt(run_var + eps) * gamma + beta
    return jnp.transpose(jnp.tanh(y), (0, 3, 1, 2))


if __name__ == "__main__":
    # Small shapes consistent with the module: N=2, C_in=4, H=W=16, C_out=8, kernel=3.
    N, Cin, H, W = 2, 4, 16, 16
    Cout, K = 8, 3
    pad = K // 2

    key = jax.random.PRNGKey(0)
    kx, kw, kb, kg, kbeta, km, kv = jax.random.split(key, 7)

    x = jax.random.normal(kx, (N, Cin, H, W), jnp.float32)
    w = jax.random.normal(kw, (Cout, Cin, K, K), jnp.float32) * 0.1    # Conv2d weight (OIHW)
    b = jax.random.normal(kb, (Cout,), jnp.float32) * 0.1              # Conv2d bias
    gamma = 1.0 + 0.1 * jax.random.normal(kg, (Cout,), jnp.float32)    # BN weight
    beta = 0.1 * jax.random.normal(kbeta, (Cout,), jnp.float32)        # BN bias
    run_mean = 0.1 * jax.random.normal(km, (Cout,), jnp.float32)       # BN running_mean
    run_var = 1.0 + 0.1 * jax.random.uniform(kv, (Cout,), jnp.float32) # BN running_var

    # jit the whole block so the NCHW<->NHWC / pad glue is fused by XLA around the kernel.
    fwd = jax.jit(functools.partial(convolution_block, padding=pad))
    out = jax.block_until_ready(fwd(x, w, b, gamma, beta, run_mean, run_var))

    ref = _reference(x, w, b, gamma, beta, run_mean, run_var, padding=pad)
    assert out.shape == (N, Cout, H, W)
    assert jnp.allclose(out, ref, atol=1e-5, rtol=1e-5), "mismatch vs JAX reference"

    print("KERNEL_OK")
</pallas_src>

<mosaic_0001>
module attributes {stable_mosaic.version = 11 : i64} {
  func.func @_conv_bn_tanh_kernel(%arg0: i32, %arg1: memref<1x18x72xf32, #tpu.memory_space<vmem>>, %arg2: memref<216x128xf32, #tpu.memory_space<vmem>>, %arg3: memref<1x128xf32, #tpu.memory_space<vmem>>, %arg4: memref<1x16x128xf32, #tpu.memory_space<vmem>>) attributes {dimension_semantics = [#tpu.dimension_semantics<parallel>], iteration_bounds = array<i64: 2>, scalar_prefetch = 0 : i64, scratch_operands = 0 : i64, tpu.core_type = #tpu.core_type<tc>, window_params = [{transform_indices = @transform_0, window_bounds = array<i64: 1, 18, 72>}, {pipeline_mode = #tpu.pipeline_mode<synchronous>, transform_indices = @transform_1, window_bounds = array<i64: 216, 128>}, {pipeline_mode = #tpu.pipeline_mode<synchronous>, transform_indices = @transform_2, window_bounds = array<i64: 1, 128>}, {transform_indices = @transform_3, window_bounds = array<i64: 1, 16, 128>}]} {
    %c0 = arith.constant 0 : index
    %c0_0 = arith.constant 0 : index
    %c0_1 = arith.constant 0 : index
    %0 = vector.load %arg1[%c0, %c0_0, %c0_1] : memref<1x18x72xf32, #tpu.memory_space<vmem>>, vector<1x16x72xf32>
    %1 = vector.shape_cast %0 : vector<1x16x72xf32> to vector<16x72xf32>
    %c0_2 = arith.constant 0 : index
    %c1 = arith.constant 1 : index
    %c0_3 = arith.constant 0 : index
    %2 = vector.load %arg1[%c0_2, %c1, %c0_3] : memref<1x18x72xf32, #tpu.memory_space<vmem>>, vector<1x16x72xf32>
    %3 = vector.shape_cast %2 : vector<1x16x72xf32> to vector<16x72xf32>
    %c0_4 = arith.constant 0 : index
    %c2 = arith.constant 2 : index
    %c0_5 = arith.constant 0 : index
    %4 = vector.load %arg1[%c0_4, %c2, %c0_5] : memref<1x18x72xf32, #tpu.memory_space<vmem>>, vector<1x16x72xf32>
    %5 = vector.shape_cast %4 : vector<1x16x72xf32> to vector<16x72xf32>
    %6 = tpu.concatenate %1, %3, %5 in 1 : vector<16x72xf32>, vector<16x72xf32>, vector<16x72xf32> -> vector<16x216xf32>
    %c0_6 = arith.constant 0 : index
    %c0_7 = arith.constant 0 : index
    %7 = vector.load %arg2[%c0_6, %c0_7] : memref<216x128xf32, #tpu.memory_space<vmem>>, vector<216x128xf32>
    %cst = arith.constant dense<0.000000e+00> : vector<16x128xf32>
    %8 = tpu.matmul %6, %7, %cst {dimension_numbers = #tpu.dot_dimension_numbers<[1], [0], [0], [1], [0, 0, 1, 1], [], []>} : vector<16x216xf32>, vector<216x128xf32>, vector<16x128xf32> -> vector<16x128xf32>
    %c0_8 = arith.constant 0 : index
    %c0_9 = arith.constant 0 : index
    %9 = vector.load %arg3[%c0_8, %c0_9] : memref<1x128xf32, #tpu.memory_space<vmem>>, vector<1x128xf32>
    %10 = vector.broadcast %9 : vector<1x128xf32> to vector<16x128xf32>
    %11 = arith.addf %8, %10 : vector<16x128xf32>
    %12 = math.tanh %11 : vector<16x128xf32>
    %c0_10 = arith.constant 0 : index
    %c0_11 = arith.constant 0 : index
    %c0_12 = arith.constant 0 : index
    %13 = vector.load %arg4[%c0_10, %c0_11, %c0_12] : memref<1x16x128xf32, #tpu.memory_space<vmem>>, vector<1x16x128xf32>
    %14 = vector.shape_cast %13 : vector<1x16x128xf32> to vector<16x128xf32>
    %15 = vector.shape_cast %12 : vector<16x128xf32> to vector<1x16x128xf32>
    tpu.vector_store %arg4[%c0_10, %c0_11, %c0_12], %15 {strides = array<i32>} : memref<1x16x128xf32, #tpu.memory_space<vmem>>, vector<1x16x128xf32>,
    return
  }
  func.func @transform_0(%arg0: i32) -> (i32, i32, i32) {
    %c0_i32 = arith.constant 0 : i32
    %c0_i32_0 = arith.constant 0 : i32
    %c0_i32_1 = arith.constant 0 : i32
    return %arg0, %c0_i32, %c0_i32_0 : i32, i32, i32
  }
  func.func @transform_1(%arg0: i32) -> (i32, i32) {
    %c0_i32 = arith.constant 0 : i32
    %c0_i32_0 = arith.constant 0 : i32
    %c0_i32_1 = arith.constant 0 : i32
    return %c0_i32, %c0_i32_0 : i32, i32
  }
  func.func @transform_2(%arg0: i32) -> (i32, i32) {
    %c0_i32 = arith.constant 0 : i32
    %c0_i32_0 = arith.constant 0 : i32
    %c0_i32_1 = arith.constant 0 : i32
    return %c0_i32, %c0_i32_0 : i32, i32
  }
  func.func @transform_3(%arg0: i32) -> (i32, i32, i32) {
    %c0_i32 = arith.constant 0 : i32
    %c0_i32_0 = arith.constant 0 : i32
    %c0_i32_1 = arith.constant 0 : i32
    return %arg0, %c0_i32, %c0_i32_0 : i32, i32, i32
  }
}

</mosaic_0001>

<bundles_post_ra>
// kernel: tile.8
= control target key start
LH: loop header
LB: loop body
LE: loop exit
PB: predicated region body
PF: predicated region fallthrough
CT: control target
= control target key end

     0   :  { %s28_s0 = inlined_call_operand.vmem [shape: f32[8], index: 0, kind: input, shape index: {}]   ;;  %s29_s1 = inlined_call_operand.vmem [shape: f32[16,8], index: 1, kind: output, shape index: {}]  }
   0x1   :  { %v4_v0 = vld [vmem:[%s28_s0] ss:$0 sm:$0xff] }
   0x2   :  { %5 = vst [vmem:[%s29_s1] sm:$0xff] %v4_v0 }
   0x3   :  { %8 = vst [vmem:[%s29_s1 + $0x8] sm:$0xff] %v4_v0 }

// kernel: tile.9
= control target key start
LH: loop header
LB: loop body
LE: loop exit
PB: predicated region body
PF: predicated region fallthrough
CT: control target
= control target key end

     0   :  { %s131_s10 = smov 120   ;;  %s132_s11 = smov 104   ;;  %vm3_vm0 = vcmask 64512   ;;  %vm9_vm1 = vcmask 1048512   ;;  %vm15_vm2 = vcmask 982912   ;;  %vm21_vm3 = vcmask 917312   ;;  %s207_s0 = inlined_call_operand.vmem [shape: f32[16,8], index: 0, kind: input, shape index: {}]   ;;  %s208_s1 = inlined_call_operand.vmem [shape: f32[1,128], index: 1, kind: output, shape index: {}]  }
   0x1   :  { %v101_v0 = vld [vmem:[%s207_s0 + $0xf] sm:$0x1]   ;;  %v103_v1 = vld [vmem:[%s207_s0 + $0xd] sm:$0x1]   ;;  %v105_v2 = vld [vmem:[%s207_s0 + $0xb] sm:$0x1]  }
   0x2   :  { %7 = vrot.lane.b32.xlu0 %v101_v0, %s131_s10  ;;  %19 = vrot.lane.b32.xlu1 %v103_v1, %s132_s11  ;;  %s133_s14 = smov 88   ;;  %v102_v3 = vld [vmem:[%s207_s0 + $0xe] sm:$0x1]   ;;  %v104_v4 = vld [vmem:[%s207_s0 + $0xc] sm:$0x1]   ;;  %s134_s19 = smov 112  }
   0x3   :  { %31 = vrot.lane.b32.xlu2 %v105_v2, %s133_s14  ;;  %s135_s20 = smov 96   ;;  %v106_v5 = vld [vmem:[%s207_s0 + $0xa] sm:$0x1]   ;;  %s136_s23 = smov 80   ;;  %v107_v6 = vld [vmem:[%s207_s0 + $0x9] sm:$0x1]  }
   0x4   :  { %v108_v7 = vld [vmem:[%s207_s0 + $0x8] sm:$0x1]   ;;  %s137_s28 = smov 72   ;;  %s138_s29 = smov 64   ;;  %v109_v8 = vld [vmem:[%s207_s0 + $0x7] sm:$0x1]  }
   0x5   :  { %s139_s3 = smov 56   ;;  %v110_v9 = vld [vmem:[%s207_s0 + $0x6] sm:$0x1]   ;;  %v111_v10 = vld [vmem:[%s207_s0 + $0x5] sm:$0x1]   ;;  %s140_s8 = smov 48  }
   0x6   :  { %s141_s9 = smov 40   ;;  %v112_v11 = vld [vmem:[%s207_s0 + $0x4] sm:$0x1]   ;;  %s142_s12 = smov 32   ;;  %v113_v12 = vld [vmem:[%s207_s0 + $0x3] sm:$0x1]  }
   0x7   :  { %v114_v13 = vld [vmem:[%s207_s0 + $0x2] sm:$0x1]   ;;  %s143_s17 = smov 24   ;;  %s144_s18 = smov 16   ;;  %v115_v14 = vld [vmem:[%s207_s0 + $0x1] sm:$0x1]  }
   0x8   :  { %s145_s21 = smov 8   ;;  %v2_v15 = vld [vmem:[%s207_s0] sm:$0x1]   ;;  %vm27_vm4 = vcmask 851712   ;;  %vm33_vm5 = vcmask 786112   ;;  %vm39_vm6 = vcmask 720512  }
   0x9   :  { %4 = vst.msk [vmem:[#allocation0] sm:$0x1] %vm3_vm0, %v2_v15   ;;  %vm45_vm7 = vcmask 654912   ;;  %vm51_vm8 = vcmask 589312   ;;  %vm57_vm9 = vcmask 523712   ;;  %vm63_vm10 = vcmask 458112  }
   0xa   :  { %13 = vrot.lane.b32.xlu0 %v102_v3, %s134_s19  ;;  %25 = vrot.lane.b32.xlu1 %v104_v4, %s135_s20  ;;  %vm69_vm11 = vcmask 392512   ;;  %vm75_vm12 = vcmask 326912   ;;  %vm81_vm13 = vcmask 261312   ;;  %vm87_vm14 = vcmask 195712  }
   0xb   :  { %37 = vrot.lane.b32.xlu2 %v106_v5, %s136_s23  ;;  %vm93_vm15 = vcmask 130112  }
  0x12   :  { %43 = vrot.lane.b32.xlu0 %v107_v6, %s137_s28  ;;  %49 = vrot.lane.b32.xlu1 %v108_v7, %s138_s29 }
  0x13   :  { %55 = vrot.lane.b32.xlu2 %v109_v8, %s139_s3 }
  0x1a   :  { %61 = vrot.lane.b32.xlu0 %v110_v9, %s140_s8  ;;  %67 = vrot.lane.b32.xlu1 %v111_v10, %s141_s9 }
  0x1b   :  { %73 = vrot.lane.b32.xlu2 %v112_v11, %s142_s12 }
  0x22   :  { %79 = vrot.lane.b32.xlu0 %v113_v12, %s143_s17  ;;  %85 = vrot.lane.b32.xlu1 %v114_v13, %s144_s18 }
  0x23   :  { %91 = vrot.lane.b32.xlu2 %v115_v14, %s145_s21 }
  0x5d   :  { %v32_v16 = vpop.permute.xlu2 %31  }
  0x65   :  { %v38_v17 = vpop.permute.xlu2 %37  }
  0x6d   :  { %v56_v18 = vpop.permute.xlu2 %55  }
  0x74   :  { %v8_v19 = vpop.permute.xlu0 %7   ;;  %v20_v20 = vpop.permute.xlu1 %19  }
  0x75   :  { %10 = vst.msk [vmem:[#allocation0] sm:$0x1] %vm9_vm1, %v8_v19   ;;  %v74_v21 = vpop.permute.xlu2 %73  }
  0x7c   :  { %v14_v22 = vpop.permute.xlu0 %13   ;;  %v26_v23 = vpop.permute.xlu1 %25  }
  0x7d   :  { %16 = vst.msk [vmem:[#allocation0] sm:$0x1] %vm15_vm2, %v14_v22   ;;  %v92_v24 = vpop.permute.xlu2 %91  }
  0x7e   :  { %22 = vst.msk [vmem:[#allocation0] sm:$0x1] %vm21_vm3, %v20_v20  }
  0x7f   :  { %28 = vst.msk [vmem:[#allocation0] sm:$0x1] %vm27_vm4, %v26_v23  }
  0x80   :  { %34 = vst.msk [vmem:[#allocation0] sm:$0x1] %vm33_vm5, %v32_v16  }
  0x81   :  { %40 = vst.msk [vmem:[#allocation0] sm:$0x1] %vm39_vm6, %v38_v17  }
  0x84   :  { %v44_v25 = vpop.permute.xlu0 %43   ;;  %v50_v26 = vpop.permute.xlu1 %49  }
  0x85   :  { %46 = vst.msk [vmem:[#allocation0] sm:$0x1] %vm45_vm7, %v44_v25  }
  0x86   :  { %52 = vst.msk [vmem:[#allocation0] sm:$0x1] %vm51_vm8, %v50_v26  }
  0x87   :  { %58 = vst.msk [vmem:[#allocation0] sm:$0x1] %vm57_vm9, %v56_v18  }
  0x8c   :  { %v62_v27 = vpop.permute.xlu0 %61   ;;  %v68_v28 = vpop.permute.xlu1 %67  }
  0x8d   :  { %64 = vst.msk [vmem:[#allocation0] sm:$0x1] %vm63_vm10, %v62_v27  }
  0x8e   :  { %70 = vst.msk [vmem:[#allocation0] sm:$0x1] %vm69_vm11, %v68_v28  }
  0x8f   :  { %76 = vst.msk [vmem:[#allocation0] sm:$0x1] %vm75_vm12, %v74_v21  }
  0x94   :  { %v80_v29 = vpop.permute.xlu0 %79   ;;  %v86_v30 = vpop.permute.xlu1 %85  }
  0x95   :  { %82 = vst.msk [vmem:[#allocation0] sm:$0x1] %vm81_vm13, %v80_v29  }
  0x96   :  { %88 = vst.msk [vmem:[#allocation0] sm:$0x1] %vm87_vm14, %v86_v30  }
  0x97   :  { %94 = vst.msk [vmem:[#allocation0] sm:$0x1] %vm93_vm15, %v92_v24  }
  0x9e   :  { %v97_v31 = vld [vmem:[#allocation0] sm:$0x1] }
  0x9f   :  { %100 = vst [vmem:[%s208_s1] sm:$0x1] %v97_v31 }

// kernel: convolution_block.1
= control target key start
LH: loop header
LB: loop body
LE: loop exit
PB: predicated region body
PF: predicated region fallthrough
CT: control target
= control target key end

     0   :  { %s417_s12 = smov 0   ;;  %s530_s0 = inlined_call_operand.vmem [shape: f32[2,18,72], index: 0, kind: input, shape index: {}]   ;;  %s531_s1 = inlined_call_operand.vmem [shape: f32[216,128], index: 1, kind: input, shape index: {}]   ;;  %s532_s2 = inlined_call_operand.vmem [shape: f32[1,128], index: 2, kind: input, shape index: {}]   ;;  %s533_s3 = inlined_call_operand.vmem [shape: f32[2,16,128], index: 3, kind: output, shape index: {}]  }
   0x1 LB: > { %s342_s13 = sadd.s32 4294967295, %s393_s12   ;;  %p346_p0 = scmp.ge.s32.totalorder %s393_s12, 1  ;;  %s393_s12 = sphi %s417_s12, %s13_s12  }
   0x2   : > { %p137_p1 = scmp.lt.s32.totalorder %s393_s12, 3 }
   0x4   : > { %p138_p2 = pnand %p346_p0, %p137_p1 }
   0x5   : > { %p161_p3 = scmp.lt.s32.totalorder (!%p138_p2), %s342_s13, 1  ;;  %s395_s7 = smov (!%p138_p2), 16  }
   0x6   : > { %141 = sbr.rel (%p138_p2) target bundleno = 286 (0x11e), region = 32  ;;  %s396_s8 = smov (!%p138_p2), 72  }
   0xb   : > { %v214_v0 = vld [vmem:[%s531_s1 + $0x78] sm:$0xff]  ;;  %v213_v1 = vld [vmem:[%s531_s1 + $0x70] sm:$0xff]  ;;  %s535_s13 = smov (!%p161_p3, %s342_s13), 1  ;;  %v212_v2 = vld [vmem:[%s531_s1 + $0x68] sm:$0xff]  ;;  %vm193_vm0 = vcmask 588800   ;;  %vm196_vm1 = vcmask 130048  }
   0xc   : > { %237 = vmatpush.msra.mxu0 %v214_v0  ;;  %355 = vmatpush.msra.mxu2 %v214_v0  ;;  %v225_v3 = vld [vmem:[%s531_s1 + $0xd0] sm:$0xff]  ;;  %v224_v4 = vld [vmem:[%s531_s1 + $0xc8] sm:$0xff]  ;;  %s371_s24 = smul.u32 24, %s535_s13  ;;  %v211_v5 = vld [vmem:[%s531_s1 + $0x60] sm:$0xff]  ;;  %vm230_vm2 = vcmask 719872   ;;  %s354_s27 = sshll.u32 %s535_s13, 4 }
   0xd   : > { %265 = vmatpush.msra.mxu1 %v225_v3  ;;  %v210_v6 = vld [vmem:[%s531_s1 + $0x58] sm:$0xff]  ;;  %v223_v7 = vld [vmem:[%s531_s1 + $0xc0] sm:$0xff]  ;;  %v209_v10 = vld [vmem:[%s531_s1 + $0x50] sm:$0xff] }
   0xe   : > { %238 = vmatpush.msra.mxu0 %v213_v1  ;;  %356 = vmatpush.msra.mxu2 %v213_v1  ;;  %s449_s29 = scalar_lea.vmem %s530_s0, %s371_s24  ;;  %v222_v11 = vld [vmem:[%s531_s1 + $0xb8] sm:$0xff]  ;;  %v208_v12 = vld [vmem:[%s531_s1 + $0x48] sm:$0xff]  ;;  %v221_v13 = vld [vmem:[%s531_s1 + $0xb0] sm:$0xff] }
   0xf   : > { %266 = vmatpush.msra.mxu1 %v224_v4  ;;  %v175_v8 = vld [vmem:[%s449_s29 + $0x2] sm:$0xff]  ;;  %v176_v16 = vld [vmem:[%s449_s29 + $0xa] sm:$0xff]  ;;  %v206_v18 = vld [vmem:[%s531_s1 + $0x38] sm:$0xff] }
  0x10   : > { %239 = vmatpush.msra.mxu0 %v212_v2  ;;  %357 = vmatpush.msra.mxu2 %v212_v2  ;;  %v173_v9 = vld [vmem:[%s449_s29 + $0x1] sm:$0xff]  ;;  %v174_v17 = vld [vmem:[%s449_s29 + $0x9] sm:$0xff]  ;;  %v218_v21 = vld [vmem:[%s531_s1 + $0x98] sm:$0xff] }
  0x11   : > { %187 = vrot.lane.b32.xlu1 %v175_v8, %s395_s7  ;;  %179 = vrot.lane.b32.xlu0 %v173_v9, %s396_s8  ;;  %v207_v14 = vld [vmem:[%s531_s1 + $0x40] sm:$0xff]  ;;  %v220_v15 = vld [vmem:[%s531_s1 + $0xa8] sm:$0xff] }
  0x12   : > { %240 = vmatpush.msra.mxu0 %v211_v5  ;;  %358 = vmatpush.msra.mxu2 %v211_v5  ;;  %v219_v19 = vld [vmem:[%s531_s1 + $0xa0] sm:$0xff]  ;;  %v205_v20 = vld [vmem:[%s531_s1 + $0x30] sm:$0xff]  ;;  %v204_v22 = vld [vmem:[%s531_s1 + $0x28] sm:$0xff] }
  0x13   : > { %267 = vmatpush.msra.mxu1 %v223_v7  ;;  %v217_v23 = vld [vmem:[%s531_s1 + $0x90] sm:$0xff]  ;;  %v203_v24 = vld [vmem:[%s531_s1 + $0x20] sm:$0xff]  ;;  %v216_v25 = vld [vmem:[%s531_s1 + $0x88] sm:$0xff] }
  0x14   : > { %241 = vmatpush.msra.mxu0 %v210_v6  ;;  %359 = vmatpush.msra.mxu2 %v210_v6  ;;  %v202_v26 = vld [vmem:[%s531_s1 + $0x18] sm:$0xff]  ;;  %v201_v27 = vld [vmem:[%s531_s1 + $0x10] sm:$0xff]  ;;  %v200_v28 = vld [vmem:[%s531_s1 + $0x8] sm:$0xff] }
  0x15   : > { %268 = vmatpush.msra.mxu1 %v222_v11  ;;  %v199_v29 = vld [vmem:[%s531_s1] sm:$0xff]  ;;  %v172_v36 = vld [vmem:[%s449_s29 + $0x8] sm:$0xff] }
  0x16   : > { %242 = vmatpush.msra.mxu0 %v209_v10  ;;  %360 = vmatpush.msra.mxu2 %v209_v10  ;;  %v215_v30 = vld [vmem:[%s531_s1 + $0x80] sm:$0xff] }
  0x17   : > { %269 = vmatpush.msra.mxu1 %v221_v13  ;;  %v171_v31 = vld [vmem:[%s449_s29] sm:$0xff]  ;;  %s170_s29 = scalar_lea.vmem %s533_s3, %s354_s27 }
  0x18   : > { %243 = vmatpush.msra.mxu0 %v208_v12  ;;  %361 = vmatpush.msra.mxu2 %v208_v12  ;;  %v382_v41 = vld [vmem:[%s532_s2] ss:$0 sm:$0xff] }
  0x19   : > { %270 = vmatpush.msra.mxu1 %v220_v15  ;;  %189 = vrot.lane.b32.xlu1 %v176_v16, %s395_s7 }
  0x1a   : > { %244 = vmatpush.msra.mxu0 %v207_v14  ;;  %181 = vrot.lane.b32.xlu0 %v174_v17, %s396_s8 }
  0x1b   : > { %362 = vmatpush.msra.mxu2 %v207_v14  ;;  %271 = vmatpush.msra.mxu1 %v219_v19 }
  0x1c   : > { %245 = vmatpush.msra.mxu0 %v206_v18 }
  0x1d   : > { %363 = vmatpush.msra.mxu2 %v206_v18  ;;  %272 = vmatpush.msra.mxu1 %v218_v21 }
  0x1e   : > { %246 = vmatpush.msra.mxu0 %v205_v20 }
  0x1f   : > { %364 = vmatpush.msra.mxu2 %v205_v20  ;;  %273 = vmatpush.msra.mxu1 %v217_v23 }
  0x20   : > { %247 = vmatpush.msra.mxu0 %v204_v22 }
  0x21   : > { %365 = vmatpush.msra.mxu2 %v204_v22  ;;  %274 = vmatpush.msra.mxu1 %v216_v25 }
  0x22   : > { %248 = vmatpush.msra.mxu0 %v203_v24 }
  0x23   : > { %366 = vmatpush.msra.mxu2 %v203_v24  ;;  %275 = vmatpush.msra.mxu1 %v215_v30 }
  0x24   : > { %249 = vmatpush.msra.mxu0 %v202_v26 }
  0x25   : > { %367 = vmatpush.msra.mxu2 %v202_v26 }
  0x26   : > { %250 = vmatpush.msra.mxu0 %v201_v27 }
  0x27   : > { %368 = vmatpush.msra.mxu2 %v201_v27 }
  0x28   : > { %251 = vmatpush.msra.mxu0 %v200_v28 }
  0x29   : > { %369 = vmatpush.msra.mxu2 %v200_v28 }
  0x2a   : > { %252 = vmatpush.msra.mxu0 %v199_v29 }
  0x2b   : > { %370 = vmatpush.msra.mxu2 %v199_v29 }
  0x83   : > { %v188_v32 = vpop.permute.xlu1 %187  ;;  %v180_v33 = vpop.permute.xlu0 %179 }
  0x84   : > { %v194_v34 = vsel %vm193_vm0, %v171_v31, %v180_v33  ;;  %v197_v35 = vsel %vm196_vm1, %v180_v33, %v188_v32 }
  0x85   : > { %253 = vmatmul.f32.vlgmr.msra.gmra.mxu0 %v194_v34  ;;  %350 = vmatmul.msk.f32.vlgmr.msra.gmra.mxu1 %vm230_vm2, %v197_v35 }
  0x8b   : > { %v190_v37 = vpop.permute.xlu1 %189 }
  0x8c   : > { %v182_v38 = vpop.permute.xlu0 %181 }
  0x8d   : > { %v195_v39 = vsel %vm193_vm0, %v172_v36, %v182_v38  ;;  %v198_v40 = vsel %vm196_vm1, %v182_v38, %v190_v37 }
  0x8e   : > { %256 = vmatmul.f32.vlgmr.msra.gmra.mxu2 %v195_v39  ;;  %351 = vmatmul.msk.f32.gmra.mxu1 %vm230_vm2, %v198_v40 }
 0x102   : > { %v254_v42 = vpop.f32.mrf.mxu0  ;;  %v277_v44 = vpop.f32.mrf.mxu1 }
 0x103   : > { %v255_v43 = vadd.f32 %v382_v41, %v254_v42 }
 0x105   : > { %v278_v45 = vadd.f32 %v277_v44, %v255_v43 }
 0x107   : > { %383 = vtanh.f32 %v278_v45 }
 0x10b   : > { %v280_v49 = vpop.f32.mrf.mxu1 }
 0x10d   : > { %v384_v46 = vpop.eup %383 }
 0x10e   : > { %285 = vst [vmem:[%s170_s29] sm:$0xff] %v384_v46 }
 0x111   : > { %v257_v47 = vpop.f32.mrf.mxu2 }
 0x112   : > { %v258_v48 = vadd.f32 %v382_v41, %v257_v47 }
 0x114   : > { %v281_v50 = vadd.f32 %v280_v49, %v258_v48 }
 0x116   : > { %385 = vtanh.f32 %v281_v50 }
 0x11c   : > { %v386_v51 = vpop.eup %385 }
 0x11d   : > { %286 = vst [vmem:[%s170_s29 + $0x8] sm:$0xff] %v386_v51 }
 0x11e PF: > { %s13_s12 = sadd.s32 1, %s393_s12  }
 0x11f   : > { %p10_p4 = scmp.ge.s32.totalorder %s13_s12, 4  }
 0x121   :  { %12 = sbr.rel (!%p10_p4) target bundleno = 1 (0x1), region = 62 }

</bundles_post_ra>
